<compile_context>
chip_gen: v5e
topology: v5e:2x2
jax: 0.10.0
libtpu: 0.0.40
codegen_flags: <defaults>
</compile_context>

<pallas_src>
import functools

import jax
import jax.numpy as jnp
from jax.experimental import pallas as pl
from jax.experimental.pallas import tpu as pltpu


EXPANSION = 4
_ROW_TILE = 512        # large enough to amortize per-grid-step overhead,
                       # small enough to double-buffer inside 64 MiB (v7x)


def _round_up(x, m):
    return (x + m - 1) // m * m


def _pick_row_tile(M, tm):
    return min(tm, _round_up(M, 8))


# ----------------------------- Pallas kernels ------------------------------

def _matmul_stats_kernel(x_ref, w_ref, o_ref, sum_ref, ssq_ref):
    """1x1 conv (row-tiled matmul) with fused per-channel sum / sum-of-squares.

    The (1, C) stats outputs map to the same block for every grid step, so
    they stay resident in VMEM and accumulate across the 'arbitrary' grid axis.
    """
    y = jnp.dot(x_ref[...], w_ref[...], preferred_element_type=jnp.float32)
    o_ref[...] = y

    @pl.when(pl.program_id(0) == 0)
    def _():
        sum_ref[...] = jnp.zeros_like(sum_ref)
        ssq_ref[...] = jnp.zeros_like(ssq_ref)

    sum_ref[...] += jnp.sum(y, axis=0, keepdims=True)
    ssq_ref[...] += jnp.sum(y * y, axis=0, keepdims=True)


def _conv3x3_stats_kernel(*refs, stride, out_hw):
    """3x3 conv with stride folded in (parity-plane inputs) + fused stats.

    refs = (plane_0 .. plane_{s*s-1}, w, out, sum, ssq)
      plane_p : (1, Hp, Wp, Cin)  strided parity plane of the zero-padded input
      w       : (3, 3, Cin, Cout)
      out     : (1, Ho, Wo, Cout)
      sum/ssq : (1, Cout)         batch accumulators (revisited across grid)

    Only the Ho x Wo needed output pixels are produced (no full-res conv).
    """
    s = stride
    Ho, Wo = out_hw
    nplanes = s * s
    planes = refs[:nplanes]
    w_ref = refs[nplanes]
    o_ref, sum_ref, ssq_ref = refs[nplanes + 1], refs[nplanes + 2], refs[nplanes + 3]

    cin = planes[0].shape[3]
    cout = o_ref.shape[3]

    acc = jnp.zeros((Ho * Wo, cout), dtype=jnp.float32)
    for kh in range(3):
        for kw in range(3):
            # input index (s*oh + kh, s*ow + kw) lives in parity plane
            # (kh % s, kw % s) at contiguous offset (kh//s + oh, kw//s + ow)
            pr = planes[(kh % s) * s + (kw % s)]
            patch = pr[0, kh // s:kh // s + Ho, kw // s:kw // s + Wo, :]
            acc = acc + jnp.dot(patch.reshape(Ho * Wo, cin), w_ref[kh, kw],
                                preferred_element_type=jnp.float32)
    o_ref[0] = acc.reshape(Ho, Wo, cout)

    @pl.when(pl.program_id(0) == 0)
    def _():
        sum_ref[...] = jnp.zeros_like(sum_ref)
        ssq_ref[...] = jnp.zeros_like(ssq_ref)

    sum_ref[...] += jnp.sum(acc, axis=0, keepdims=True)
    ssq_ref[...] += jnp.sum(acc * acc, axis=0, keepdims=True)


def _bn_norm_kernel(x_ref, sum_ref, ssq_ref, g_ref, b_ref, o_ref,
                    *, count, eps, relu):
    """Row-tiled BN normalize (+ optional ReLU) from precomputed batch sums."""
    inv = 1.0 / count
    mean = sum_ref[...] * inv
    var = ssq_ref[...] * inv - mean * mean          # biased variance
    scale = jax.lax.rsqrt(var + eps) * g_ref[...]
    shift = b_ref[...] - mean * scale
    y = x_ref[...] * scale + shift
    if relu:
        y = jnp.maximum(y, 0.0)
    o_ref[...] = y


def _bn_bn_add_relu_kernel(x_ref, xs_ref, xq_ref, xg_ref, xb_ref,
                           r_ref, rs_ref, rq_ref, rg_ref, rb_ref,
                           o_ref, *, count, eps):
    """relu( bn3(x) + bn_shortcut(r) ) fused in one pass."""
    inv = 1.0 / count
    xm = xs_ref[...] * inv
    xv = xq_ref[...] * inv - xm * xm
    xsc = jax.lax.rsqrt(xv + eps) * xg_ref[...]
    xsh = xb_ref[...] - xm * xsc
    rm = rs_ref[...] * inv
    rv = rq_ref[...] * inv - rm * rm
    rsc = jax.lax.rsqrt(rv + eps) * rg_ref[...]
    rsh = rb_ref[...] - rm * rsc
    y = x_ref[...] * xsc + xsh + r_ref[...] * rsc + rsh
    o_ref[...] = jnp.maximum(y, 0.0)


def _bn_add_identity_relu_kernel(x_ref, xs_ref, xq_ref, xg_ref, xb_ref,
                                 r_ref, o_ref, *, count, eps):
    """relu( bn3(x) + r ) for the identity shortcut."""
    inv = 1.0 / count
    xm = xs_ref[...] * inv
    xv = xq_ref[...] * inv - xm * xm
    xsc = jax.lax.rsqrt(xv + eps) * xg_ref[...]
    xsh = xb_ref[...] - xm * xsc
    o_ref[...] = jnp.maximum(x_ref[...] * xsc + xsh + r_ref[...], 0.0)


# ------------------------------ kernel wrappers -----------------------------

def matmul_1x1_stats(x2d, w, tm=_ROW_TILE):
    """x2d: (M, Cin), w: (Cin, Cout) -> ((M, Cout), (1, Cout) sum, (1, Cout) ssq)."""
    M, cin = x2d.shape
    cout = w.shape[1]
    tm = _pick_row_tile(M, tm)
    Mp = _round_up(M, tm)
    if Mp != M:
        # zero rows contribute nothing to the channel sums
        x2d = jnp.pad(x2d, ((0, Mp - M), (0, 0)))
    y, su, sq = pl.pallas_call(
        _matmul_stats_kernel,
        out_shape=(jax.ShapeDtypeStruct((Mp, cout), jnp.float32),
                   jax.ShapeDtypeStruct((1, cout), jnp.float32),
                   jax.ShapeDtypeStruct((1, cout), jnp.float32)),
        grid=(Mp // tm,),
        in_specs=[pl.BlockSpec((tm, cin), lambda i: (i, 0)),
                  pl.BlockSpec((cin, cout), lambda i: (0, 0))],
        out_specs=(pl.BlockSpec((tm, cout), lambda i: (i, 0)),
                   pl.BlockSpec((1, cout), lambda i: (0, 0)),
                   pl.BlockSpec((1, cout), lambda i: (0, 0))),
        compiler_params=pltpu.CompilerParams(
            dimension_semantics=("arbitrary",)),    # stats revisit their block
    )(x2d, w)
    if Mp != M:
        y = y[:M]
    return y, su, sq


def conv3x3_stats(x_nhwc, w_hwio, stride):
    """3x3 conv, pad=1, given stride, NHWC / HWIO; stride handled in-kernel."""
    N, H, W, cin = x_nhwc.shape
    cout = w_hwio.shape[3]
    s = int(stride)
    Ho = (H - 1) // s + 1
    Wo = (W - 1) // s + 1

    # zero-pad by 1 (conv padding) plus enough on the high side so that every
    # parity plane has identical shape and covers all taps.
    HP = s * max(Ho + 2 // s, -(-(H + 2) // s))
    WP = s * max(Wo + 2 // s, -(-(W + 2) // s))
    x_pad = jnp.pad(x_nhwc, ((0, 0),
                             (1, HP - (H + 1)),
                             (1, WP - (W + 1)),
                             (0, 0)))
    Hp, Wp = HP // s, WP // s
    planes = [x_pad[:, a::s, b::s, :] for a in range(s) for b in range(s)]

    kern = functools.partial(_conv3x3_stats_kernel, stride=s, out_hw=(Ho, Wo))
    plane_spec = pl.BlockSpec((1, Hp, Wp, cin), lambda n: (n, 0, 0, 0))
    y, su, sq = pl.pallas_call(
        kern,
        out_shape=(jax.ShapeDtypeStruct((N, Ho, Wo, cout), jnp.float32),
                   jax.ShapeDtypeStruct((1, cout), jnp.float32),
                   jax.ShapeDtypeStruct((1, cout), jnp.float32)),
        grid=(N,),
        in_specs=[plane_spec] * (s * s)
                 + [pl.BlockSpec((3, 3, cin, cout), lambda n: (0, 0, 0, 0))],
        out_specs=(pl.BlockSpec((1, Ho, Wo, cout), lambda n: (n, 0, 0, 0)),
                   pl.BlockSpec((1, cout), lambda n: (0, 0)),
                   pl.BlockSpec((1, cout), lambda n: (0, 0))),
        compiler_params=pltpu.CompilerParams(
            dimension_semantics=("arbitrary",)),
    )(*planes, w_hwio)
    return y, su, sq, (Ho, Wo)


def bn_norm(x2d, ssum, ssq, gamma, beta, *, count, relu, tm=_ROW_TILE, eps=1e-5):
    M, C = x2d.shape
    tm = _pick_row_tile(M, tm)
    Mp = _round_up(M, tm)
    if Mp != M:
        x2d = jnp.pad(x2d, ((0, Mp - M), (0, 0)))
    kern = functools.partial(_bn_norm_kernel, count=count, eps=eps, relu=relu)
    big = pl.BlockSpec((tm, C), lambda i: (i, 0))
    row = pl.BlockSpec((1, C), lambda i: (0, 0))
    y = pl.pallas_call(
        kern,
        out_shape=jax.ShapeDtypeStruct((Mp, C), jnp.float32),
        grid=(Mp // tm,),
        in_specs=[big, row, row, row, row],
        out_specs=big,
        compiler_params=pltpu.CompilerParams(dimension_semantics=("parallel",)),
    )(x2d, ssum, ssq, gamma.reshape(1, C), beta.reshape(1, C))
    return y[:M] if Mp != M else y


def bn_bn_add_relu(x2d, xs, xq, xg, xb, r2d, rs, rq, rg, rb,
                   *, count, tm=_ROW_TILE, eps=1e-5):
    M, C = x2d.shape
    tm = _pick_row_tile(M, tm)
    Mp = _round_up(M, tm)
    if Mp != M:
        pad = ((0, Mp - M), (0, 0))
        x2d = jnp.pad(x2d, pad)
        r2d = jnp.pad(r2d, pad)
    kern = functools.partial(_bn_bn_add_relu_kernel, count=count, eps=eps)
    big = pl.BlockSpec((tm, C), lambda i: (i, 0))
    row = pl.BlockSpec((1, C), lambda i: (0, 0))
    y = pl.pallas_call(
        kern,
        out_shape=jax.ShapeDtypeStruct((Mp, C), jnp.float32),
        grid=(Mp // tm,),
        in_specs=[big, row, row, row, row, big, row, row, row, row],
        out_specs=big,
        compiler_params=pltpu.CompilerParams(dimension_semantics=("parallel",)),
    )(x2d, xs, xq, xg.reshape(1, C), xb.reshape(1, C),
      r2d, rs, rq, rg.reshape(1, C), rb.reshape(1, C))
    return y[:M] if Mp != M else y


def bn_add_identity_relu(x2d, xs, xq, xg, xb, r2d,
                         *, count, tm=_ROW_TILE, eps=1e-5):
    M, C = x2d.shape
    tm = _pick_row_tile(M, tm)
    Mp = _round_up(M, tm)
    if Mp != M:
        pad = ((0, Mp - M), (0, 0))
        x2d = jnp.pad(x2d, pad)
        r2d = jnp.pad(r2d, pad)
    kern = functools.partial(_bn_add_identity_relu_kernel, count=count, eps=eps)
    big = pl.BlockSpec((tm, C), lambda i: (i, 0))
    row = pl.BlockSpec((1, C), lambda i: (0, 0))
    y = pl.pallas_call(
        kern,
        out_shape=jax.ShapeDtypeStruct((Mp, C), jnp.float32),
        grid=(Mp // tm,),
        in_specs=[big, row, row, row, row, big],
        out_specs=big,
        compiler_params=pltpu.CompilerParams(dimension_semantics=("parallel",)),
    )(x2d, xs, xq, xg.reshape(1, C), xb.reshape(1, C), r2d)
    return y[:M] if Mp != M else y


# ------------------------------ Bottleneck block ----------------------------

def init_bottleneck_params(key, in_channels, out_channels):
    cmid = out_channels
    cexp = EXPANSION * out_channels
    ks = jax.random.split(key, 10)

    def w_init(k, shape, fan_in):
        return (jax.random.normal(k, shape, jnp.float32) *
                (2.0 / fan_in) ** 0.5)

    params = {
        # conv weights, channels-last storage:
        "w1": w_init(ks[0], (in_channels, cmid), in_channels),        # 1x1
        "w2": w_init(ks[1], (3, 3, cmid, cmid), 9 * cmid),            # 3x3 HWIO
        "w3": w_init(ks[2], (cmid, cexp), cmid),                      # 1x1
        "ws": w_init(ks[3], (in_channels, cexp), in_channels),        # shortcut 1x1
        # BN affine params (deterministic, non-trivial):
        "g1": 1.0 + 0.1 * jax.random.normal(ks[4], (cmid,), jnp.float32),
        "b1": 0.1 * jax.random.normal(ks[5], (cmid,), jnp.float32),
        "g2": 1.0 + 0.1 * jax.random.normal(ks[6], (cmid,), jnp.float32),
        "b2": 0.1 * jax.random.normal(ks[7], (cmid,), jnp.float32),
        "g3": 1.0 + 0.1 * jax.random.normal(ks[8], (cexp,), jnp.float32),
        "b3": 0.1 * jax.random.normal(ks[9], (cexp,), jnp.float32),
        "gs": jnp.ones((cexp,), jnp.float32),
        "bs": jnp.zeros((cexp,), jnp.float32),
    }
    return params


def bottleneck_forward(x_nchw, params, stride, tm=_ROW_TILE):
    """Forward of the PyTorch Bottleneck block (training-mode BN)."""
    N, cin, H, W = x_nchw.shape
    cmid = params["w1"].shape[1]
    cexp = params["w3"].shape[1]

    x = jnp.transpose(x_nchw, (0, 2, 3, 1)).astype(jnp.float32)   # NHWC
    M1 = N * H * W

    # conv1 (1x1) with fused batch stats -> bn1 + relu (row-tiled)
    h1_raw, s1, q1 = matmul_1x1_stats(x.reshape(M1, cin), params["w1"], tm)
    h1 = bn_norm(h1_raw, s1, q1, params["g1"], params["b1"],
                 count=M1, relu=True, tm=tm)
    h1 = h1.reshape(N, H, W, cmid)

    # conv2 (3x3, stride folded into the kernel) with fused stats -> bn2 + relu
    h2_raw, s2, q2, (Ho, Wo) = conv3x3_stats(h1, params["w2"], stride)
    M2 = N * Ho * Wo
    h2 = bn_norm(h2_raw.reshape(M2, cmid), s2, q2,
                 params["g2"], params["b2"], count=M2, relu=True, tm=tm)

    # conv3 (1x1) with fused stats; bn3 normalize fused with residual below
    h3_raw, s3, q3 = matmul_1x1_stats(h2, params["w3"], tm)

    if stride != 1 or cin != cexp:
        # projection shortcut: strided 1x1 conv + its own BN, all normalization
        # fused into the final add+relu kernel
        xs = x[:, ::stride, ::stride, :].reshape(M2, cin)
        sc_raw, ss, qs = matmul_1x1_stats(xs, params["ws"], tm)
        out = bn_bn_add_relu(h3_raw, s3, q3, params["g3"], params["b3"],
                             sc_raw, ss, qs, params["gs"], params["bs"],
                             count=M2, tm=tm)
    else:
        out = bn_add_identity_relu(h3_raw, s3, q3, params["g3"], params["b3"],
                                   x.reshape(M2, cexp), count=M2, tm=tm)

    out = out.reshape(N, Ho, Wo, cexp)
    return jnp.transpose(out, (0, 3, 1, 2))   # back to NCHW


# ------------------------------ pure-JAX reference ---------------------------

def _ref_forward(x, params, stride, eps=1e-5):
    def conv(x, w_oihw, s, pad):
        return jax.lax.conv_general_dilated(
            x, w_oihw, (s, s), pad,
            dimension_numbers=("NCHW", "OIHW", "NCHW"))

    def bn(x, g, b):
        mean = x.mean(axis=(0, 2, 3), keepdims=True)
        var = ((x - mean) ** 2).mean(axis=(0, 2, 3), keepdims=True)
        return ((x - mean) * jax.lax.rsqrt(var + eps)
                * g.reshape(1, -1, 1, 1) + b.reshape(1, -1, 1, 1))

    w1 = params["w1"].T[:, :, None, None]
    w2 = jnp.transpose(params["w2"], (3, 2, 0, 1))
    w3 = params["w3"].T[:, :, None, None]
    ws = params["ws"].T[:, :, None, None]

    out = jax.nn.relu(bn(conv(x, w1, 1, "VALID"), params["g1"], params["b1"]))
    out = jax.nn.relu(bn(conv(out, w2, stride, ((1, 1), (1, 1))),
                         params["g2"], params["b2"]))
    out = bn(conv(out, w3, 1, "VALID"), params["g3"], params["b3"])
    cin, cexp = x.shape[1], w3.shape[0]
    if stride != 1 or cin != cexp:
        sc = bn(conv(x, ws, stride, "VALID"), params["gs"], params["bs"])
    else:
        sc = x
    return jax.nn.relu(out + sc)


# ----------------------------------- main ------------------------------------

if __name__ == "__main__":
    key = jax.random.PRNGKey(0)
    k_x, k_p, k_x2, k_p2 = jax.random.split(key, 4)

    # Case 1: strided block with projection shortcut.
    in_channels, out_channels, stride = 4, 8, 2
    x = jax.random.normal(k_x, (2, in_channels, 16, 16), jnp.float32)  # NCHW
    params = init_bottleneck_params(k_p, in_channels, out_channels)

    y = jax.block_until_ready(bottleneck_forward(x, params, stride))
    y_ref = jax.block_until_ready(_ref_forward(x, params, stride))
    assert y.shape == (2, EXPANSION * out_channels, 8, 8), y.shape
    assert jnp.allclose(y, y_ref, atol=5e-4, rtol=5e-4), (
        float(jnp.max(jnp.abs(y - y_ref))))

    # Case 2: stride=1 block with identity shortcut (in == expansion*out).
    in_channels2, out_channels2, stride2 = 32, 8, 1
    x2 = jax.random.normal(k_x2, (2, in_channels2, 16, 16), jnp.float32)
    params2 = init_bottleneck_params(k_p2, in_channels2, out_channels2)

    y2 = jax.block_until_ready(bottleneck_forward(x2, params2, stride2))
    y2_ref = jax.block_until_ready(_ref_forward(x2, params2, stride2))
    assert y2.shape == (2, EXPANSION * out_channels2, 16, 16), y2.shape
    assert jnp.allclose(y2, y2_ref, atol=5e-4, rtol=5e-4), (
        float(jnp.max(jnp.abs(y2 - y2_ref))))

    print("KERNEL_OK")
</pallas_src>

<mosaic_0001>
module attributes {stable_mosaic.version = 11 : i64} {
  func.func @_matmul_stats_kernel(%arg0: i32, %arg1: memref<512x4xf32, #tpu.memory_space<vmem>>, %arg2: memref<4x8xf32, #tpu.memory_space<vmem>>, %arg3: memref<512x8xf32, #tpu.memory_space<vmem>>, %arg4: memref<1x8xf32, #tpu.memory_space<vmem>>, %arg5: memref<1x8xf32, #tpu.memory_space<vmem>>) attributes {dimension_semantics = [#tpu.dimension_semantics<arbitrary>], iteration_bounds = array<i64: 1>, scalar_prefetch = 0 : i64, scratch_operands = 0 : i64, tpu.core_type = #tpu.core_type<tc>, window_params = [{transform_indices = @transform_0, window_bounds = array<i64: 512, 4>}, {pipeline_mode = #tpu.pipeline_mode<synchronous>, transform_indices = @transform_1, window_bounds = array<i64: 4, 8>}, {transform_indices = @transform_2, window_bounds = array<i64: 512, 8>}, {pipeline_mode = #tpu.pipeline_mode<synchronous>, transform_indices = @transform_3, window_bounds = array<i64: 1, 8>}, {pipeline_mode = #tpu.pipeline_mode<synchronous>, transform_indices = @transform_4, window_bounds = array<i64: 1, 8>}]} {
    %c0 = arith.constant 0 : index
    %c0_0 = arith.constant 0 : index
    %0 = vector.load %arg1[%c0, %c0_0] : memref<512x4xf32, #tpu.memory_space<vmem>>, vector<512x4xf32>
    %c0_1 = arith.constant 0 : index
    %c0_2 = arith.constant 0 : index
    %1 = vector.load %arg2[%c0_1, %c0_2] : memref<4x8xf32, #tpu.memory_space<vmem>>, vector<4x8xf32>
    %cst = arith.constant dense<0.000000e+00> : vector<512x8xf32>
    %2 = tpu.matmul %0, %1, %cst {dimension_numbers = #tpu.dot_dimension_numbers<[1], [0], [0], [1], [0, 0, 1, 1], [], []>} : vector<512x4xf32>, vector<4x8xf32>, vector<512x8xf32> -> vector<512x8xf32>
    %c0_3 = arith.constant 0 : index
    %c0_4 = arith.constant 0 : index
    %3 = vector.load %arg3[%c0_3, %c0_4] : memref<512x8xf32, #tpu.memory_space<vmem>>, vector<512x8xf32>
    tpu.vector_store %arg3[%c0_3, %c0_4], %2 {strides = array<i32>} : memref<512x8xf32, #tpu.memory_space<vmem>>, vector<512x8xf32>,
    %c0_i32 = arith.constant 0 : i32
    %4 = arith.cmpi eq, %arg0, %c0_i32 : i32
    %5 = arith.extui %4 : i1 to i32
    %c0_i32_5 = arith.constant 0 : i32
    %6 = arith.cmpi ne, %5, %c0_i32_5 : i32
    scf.if %6 {
      %cst_16 = arith.constant 0.000000e+00 : f32
      %18 = vector.broadcast %cst_16 : f32 to vector<1x8xf32>
      %c0_17 = arith.constant 0 : index
      %c0_18 = arith.constant 0 : index
      %19 = vector.load %arg4[%c0_17, %c0_18] : memref<1x8xf32, #tpu.memory_space<vmem>>, vector<1x8xf32>
      tpu.vector_store %arg4[%c0_17, %c0_18], %18 {strides = array<i32>} : memref<1x8xf32, #tpu.memory_space<vmem>>, vector<1x8xf32>,
      %cst_19 = arith.constant 0.000000e+00 : f32
      %20 = vector.broadcast %cst_19 : f32 to vector<1x8xf32>
      %c0_20 = arith.constant 0 : index
      %c0_21 = arith.constant 0 : index
      %21 = vector.load %arg5[%c0_20, %c0_21] : memref<1x8xf32, #tpu.memory_space<vmem>>, vector<1x8xf32>
      tpu.vector_store %arg5[%c0_20, %c0_21], %20 {strides = array<i32>} : memref<1x8xf32, #tpu.memory_space<vmem>>, vector<1x8xf32>,
    } else {
    }
    %c0_6 = arith.constant 0 : index
    %c0_7 = arith.constant 0 : index
    %7 = vector.load %arg4[%c0_6, %c0_7] : memref<1x8xf32, #tpu.memory_space<vmem>>, vector<1x8xf32>
    %cst_8 = arith.constant dense<0.000000e+00> : vector<8xf32>
    %8 = vector.multi_reduction <add>, %2, %cst_8 [0] : vector<512x8xf32> to vector<8xf32>
    %9 = vector.shape_cast %8 : vector<8xf32> to vector<1x8xf32>
    %10 = arith.addf %7, %9 : vector<1x8xf32>
    %c0_9 = arith.constant 0 : index
    %c0_10 = arith.constant 0 : index
    %11 = vector.load %arg4[%c0_9, %c0_10] : memref<1x8xf32, #tpu.memory_space<vmem>>, vector<1x8xf32>
    tpu.vector_store %arg4[%c0_9, %c0_10], %10 {strides = array<i32>} : memref<1x8xf32, #tpu.memory_space<vmem>>, vector<1x8xf32>,
    %c0_11 = arith.constant 0 : index
    %c0_12 = arith.constant 0 : index
    %12 = vector.load %arg5[%c0_11, %c0_12] : memref<1x8xf32, #tpu.memory_space<vmem>>, vector<1x8xf32>
    %13 = arith.mulf %2, %2 : vector<512x8xf32>
    %cst_13 = arith.constant dense<0.000000e+00> : vector<8xf32>
    %14 = vector.multi_reduction <add>, %13, %cst_13 [0] : vector<512x8xf32> to vector<8xf32>
    %15 = vector.shape_cast %14 : vector<8xf32> to vector<1x8xf32>
    %16 = arith.addf %12, %15 : vector<1x8xf32>
    %c0_14 = arith.constant 0 : index
    %c0_15 = arith.constant 0 : index
    %17 = vector.load %arg5[%c0_14, %c0_15] : memref<1x8xf32, #tpu.memory_space<vmem>>, vector<1x8xf32>
    tpu.vector_store %arg5[%c0_14, %c0_15], %16 {strides = array<i32>} : memref<1x8xf32, #tpu.memory_space<vmem>>, vector<1x8xf32>,
    return
  }
  func.func @transform_0(%arg0: i32) -> (i32, i32) {
    %c0_i32 = arith.constant 0 : i32
    %c0_i32_0 = arith.constant 0 : i32
    return %arg0, %c0_i32 : i32, i32
  }
  func.func @transform_1(%arg0: i32) -> (i32, i32) {
    %c0_i32 = arith.constant 0 : i32
    %c0_i32_0 = arith.constant 0 : i32
    %c0_i32_1 = arith.constant 0 : i32
    return %c0_i32, %c0_i32_0 : i32, i32
  }
  func.func @transform_2(%arg0: i32) -> (i32, i32) {
    %c0_i32 = arith.constant 0 : i32
    %c0_i32_0 = arith.constant 0 : i32
    return %arg0, %c0_i32 : i32, i32
  }
  func.func @transform_3(%arg0: i32) -> (i32, i32) {
    %c0_i32 = arith.constant 0 : i32
    %c0_i32_0 = arith.constant 0 : i32
    %c0_i32_1 = arith.constant 0 : i32
    return %c0_i32, %c0_i32_0 : i32, i32
  }
  func.func @transform_4(%arg0: i32) -> (i32, i32) {
    %c0_i32 = arith.constant 0 : i32
    %c0_i32_0 = arith.constant 0 : i32
    %c0_i32_1 = arith.constant 0 : i32
    return %c0_i32, %c0_i32_0 : i32, i32
  }
}

</mosaic_0001>

<bundles_post_ra>
// kernel: tpu_custom_call.1
= control target key start
LH: loop header
LB: loop body
LE: loop exit
PB: predicated region body
PF: predicated region fallthrough
CT: control target
= control target key end

     0   :  { %10 = vsyncpa [#allocation3], 0  ;;  %vm274_vm0 = vcmask 1043456   ;;  %vm81_vm1 = vcmask 31744   ;;  %s2030_s0 = inlined_call_operand.vmem [shape: f32[512,4], index: 0, kind: input, shape index: {}]   ;;  %s2031_s1 = inlined_call_operand.vmem [shape: f32[4,8], index: 1, kind: input, shape index: {}]   ;;  %s2032_s2 = inlined_call_operand.vmem [shape: f32[512,8], index: 2, kind: output, shape index: {0}]   ;;  %s2033_s3 = inlined_call_operand.hbm [shape: f32[1,8], index: 3, kind: output, shape index: {1}]   ;;  %s2034_s4 = inlined_call_operand.hbm [shape: f32[1,8], index: 4, kind: output, shape index: {2}]  }
   0x1   :  { %v80_v0 = vld [vmem:[%s2031_s1] sm:$0xf] }
   0x2   :  { %v16_v1 = vld [vmem:[%s2030_s0] sm:$0xff]  ;;  %932 = vmatpush.msk.msra.mxu0 %vm274_vm0, %v80_v0  ;;  %997 = vmatpush.msk.msra.mxu1 %vm274_vm0, %v80_v0 }
   0x3   :  { %933 = vmatmul.msk.f32.vlgmr.msra.gmra.mxu0 %vm81_vm1, %v16_v1  ;;  %v32_v2 = vld [vmem:[%s2030_s0 + $0x80] sm:$0xff]  ;;  %998 = vmatpush.msk.msra.mxu2 %vm274_vm0, %v80_v0 }
   0x4   :  { %11 = vsyncpa [#allocation5], 0  ;;  %949 = vmatmul.msk.f32.vlgmr.msra.gmra.mxu1 %vm81_vm1, %v32_v2  ;;  %999 = vmatpush.msk.msra.mxu3 %vm274_vm0, %v80_v0  ;;  %v17_v3 = vld [vmem:[%s2030_s0 + $0x8] sm:$0xff]  ;;  %v18_v5 = vld [vmem:[%s2030_s0 + $0x10] sm:$0xff]  ;;  %vm487_vm2 = vcmask 64512   ;;  %vm556_vm3 = vcmask 57344  }
   0x5   :  { %v33_v4 = vld [vmem:[%s2030_s0 + $0x88] sm:$0xff]  ;;  %v34_v6 = vld [vmem:[%s2030_s0 + $0x90] sm:$0xff]  ;;  %v19_v7 = vld [vmem:[%s2030_s0 + $0x18] sm:$0xff]  ;;  %s905_s28 = sshll.u32 %s2033_s3, 4  ;;  %s1057_s29 = smov [#allocation4]   ;;  %s906_s28 = int_to_ptr.hbm [resolvable:$true] %s905_s28 }
   0x6   :  { %v35_v8 = vld [vmem:[%s2030_s0 + $0x98] sm:$0xff]  ;;  %v48_v9 = vld [vmem:[%s2030_s0 + $0x100] sm:$0xff]  ;;  %v49_v12 = vld [vmem:[%s2030_s0 + $0x108] sm:$0xff]  ;;  %s914_s30 = sshll.u32 %s1057_s29, 4  ;;  %s916_s7 = sshll.u32 %s2034_s4, 4  ;;  %s915_s30 = int_to_ptr.vmem [resolvable:$true] %s914_s30  ;;  %s917_s7 = int_to_ptr.hbm [resolvable:$true] %s916_s7 }
   0x7   :  { %965 = vmatmul.msk.f32.vlgmr.msra.gmra.mxu2 %vm81_vm1, %v48_v9  ;;  %v20_v10 = vld [vmem:[%s2030_s0 + $0x20] sm:$0xff]  ;;  %v21_v13 = vld [vmem:[%s2030_s0 + $0x28] sm:$0xff]  ;;  %v50_v15 = vld [vmem:[%s2030_s0 + $0x110] sm:$0xff] }
   0x8   :  { %v36_v11 = vld [vmem:[%s2030_s0 + $0xa0] sm:$0xff]  ;;  %v37_v14 = vld [vmem:[%s2030_s0 + $0xa8] sm:$0xff]  ;;  %v22_v16 = vld [vmem:[%s2030_s0 + $0x30] sm:$0xff] }
   0x9   :  { %v38_v17 = vld [vmem:[%s2030_s0 + $0xb0] sm:$0xff]  ;;  %v51_v18 = vld [vmem:[%s2030_s0 + $0x118] sm:$0xff]  ;;  %v52_v21 = vld [vmem:[%s2030_s0 + $0x120] sm:$0xff] }
   0xa   :  { %v23_v19 = vld [vmem:[%s2030_s0 + $0x38] sm:$0xff]  ;;  %v64_v22 = vld [vmem:[%s2030_s0 + $0x180] sm:$0xff]  ;;  %v53_v25 = vld [vmem:[%s2030_s0 + $0x128] sm:$0xff] }
   0xb   :  { %934 = vmatmul.msk.f32.gmra.mxu0 %vm81_vm1, %v17_v3  ;;  %v39_v20 = vld [vmem:[%s2030_s0 + $0xb8] sm:$0xff]  ;;  %981 = vmatmul.msk.f32.vlgmr.msra.gmra.mxu3 %vm81_vm1, %v64_v22  ;;  %v24_v23 = vld [vmem:[%s2030_s0 + $0x40] sm:$0xff]  ;;  %v65_v26 = vld [vmem:[%s2030_s0 + $0x188] sm:$0xff] }
   0xc   :  { %950 = vmatmul.msk.f32.gmra.mxu1 %vm81_vm1, %v33_v4  ;;  %v40_v24 = vld [vmem:[%s2030_s0 + $0xc0] sm:$0xff]  ;;  %v25_v27 = vld [vmem:[%s2030_s0 + $0x48] sm:$0xff]  ;;  %v54_v29 = vld [vmem:[%s2030_s0 + $0x130] sm:$0xff] }
   0xd   :  { %v41_v28 = vld [vmem:[%s2030_s0 + $0xc8] sm:$0xff]  ;;  %v66_v30 = vld [vmem:[%s2030_s0 + $0x190] sm:$0xff]  ;;  %v55_v33 = vld [vmem:[%s2030_s0 + $0x138] sm:$0xff] }
   0xe   :  { %v26_v31 = vld [vmem:[%s2030_s0 + $0x50] sm:$0xff]  ;;  %v67_v34 = vld [vmem:[%s2030_s0 + $0x198] sm:$0xff]  ;;  %v56_v37 = vld [vmem:[%s2030_s0 + $0x140] sm:$0xff] }
   0xf   :  { %966 = vmatmul.msk.f32.gmra.mxu2 %vm81_vm1, %v49_v12  ;;  %v42_v32 = vld [vmem:[%s2030_s0 + $0xd0] sm:$0xff]  ;;  %v27_v35 = vld [vmem:[%s2030_s0 + $0x58] sm:$0xff]  ;;  %v68_v38 = vld [vmem:[%s2030_s0 + $0x1a0] sm:$0xff] }
  0x10   :  { %v43_v36 = vld [vmem:[%s2030_s0 + $0xd8] sm:$0xff]  ;;  %v28_v39 = vld [vmem:[%s2030_s0 + $0x60] sm:$0xff]  ;;  %v57_v41 = vld [vmem:[%s2030_s0 + $0x148] sm:$0xff] }
  0x11   :  { %v44_v40 = vld [vmem:[%s2030_s0 + $0xe0] sm:$0xff]  ;;  %v69_v42 = vld [vmem:[%s2030_s0 + $0x1a8] sm:$0xff]  ;;  %v58_v45 = vld [vmem:[%s2030_s0 + $0x150] sm:$0xff] }
  0x12   :  { %v29_v43 = vld [vmem:[%s2030_s0 + $0x68] sm:$0xff]  ;;  %v70_v46 = vld [vmem:[%s2030_s0 + $0x1b0] sm:$0xff]  ;;  %v59_v49 = vld [vmem:[%s2030_s0 + $0x158] sm:$0xff] }
  0x13   :  { %935 = vmatmul.msk.f32.gmra.mxu0 %vm81_vm1, %v18_v5  ;;  %982 = vmatmul.msk.f32.gmra.mxu3 %vm81_vm1, %v65_v26  ;;  %v45_v44 = vld [vmem:[%s2030_s0 + $0xe8] sm:$0xff]  ;;  %v30_v47 = vld [vmem:[%s2030_s0 + $0x70] sm:$0xff]  ;;  %v71_v50 = vld [vmem:[%s2030_s0 + $0x1b8] sm:$0xff] }
  0x14   :  { %951 = vmatmul.msk.f32.gmra.mxu1 %vm81_vm1, %v34_v6  ;;  %v46_v48 = vld [vmem:[%s2030_s0 + $0xf0] sm:$0xff]  ;;  %v31_v51 = vld [vmem:[%s2030_s0 + $0x78] sm:$0xff]  ;;  %v60_v53 = vld [vmem:[%s2030_s0 + $0x160] sm:$0xff] }
  0x15   :  { %v47_v52 = vld [vmem:[%s2030_s0 + $0xf8] sm:$0xff]  ;;  %v72_v54 = vld [vmem:[%s2030_s0 + $0x1c0] sm:$0xff]  ;;  %v61_v57 = vld [vmem:[%s2030_s0 + $0x168] sm:$0xff] }
  0x16   :  { %v73_v58 = vld [vmem:[%s2030_s0 + $0x1c8] sm:$0xff]  ;;  %v62_v5 = vld [vmem:[%s2030_s0 + $0x170] sm:$0xff] }
  0x17   :  { %967 = vmatmul.msk.f32.gmra.mxu2 %vm81_vm1, %v50_v15  ;;  %v74_v6 = vld [vmem:[%s2030_s0 + $0x1d0] sm:$0xff]  ;;  %v75_v15 = vld [vmem:[%s2030_s0 + $0x1d8] sm:$0xff] }
  0x1b   :  { %936 = vmatmul.msk.f32.gmra.mxu0 %vm81_vm1, %v19_v7  ;;  %983 = vmatmul.msk.f32.gmra.mxu3 %vm81_vm1, %v66_v30 }
  0x1c   :  { %952 = vmatmul.msk.f32.gmra.mxu1 %vm81_vm1, %v35_v8 }
  0x1f   :  { %968 = vmatmul.msk.f32.gmra.mxu2 %vm81_vm1, %v51_v18 }
  0x23   :  { %937 = vmatmul.msk.f32.gmra.mxu0 %vm81_vm1, %v20_v10  ;;  %984 = vmatmul.msk.f32.gmra.mxu3 %vm81_vm1, %v67_v34 }
  0x24   :  { %953 = vmatmul.msk.f32.gmra.mxu1 %vm81_vm1, %v36_v11 }
  0x27   :  { %969 = vmatmul.msk.f32.gmra.mxu2 %vm81_vm1, %v52_v21 }
  0x2b   :  { %938 = vmatmul.msk.f32.gmra.mxu0 %vm81_vm1, %v21_v13  ;;  %985 = vmatmul.msk.f32.gmra.mxu3 %vm81_vm1, %v68_v38 }
  0x2c   :  { %954 = vmatmul.msk.f32.gmra.mxu1 %vm81_vm1, %v37_v14  ;;  %v63_v14 = vld [vmem:[%s2030_s0 + $0x178] sm:$0xff] }
  0x2f   :  { %970 = vmatmul.msk.f32.gmra.mxu2 %vm81_vm1, %v53_v25 }
  0x33   :  { %939 = vmatmul.msk.f32.gmra.mxu0 %vm81_vm1, %v22_v16  ;;  %986 = vmatmul.msk.f32.gmra.mxu3 %vm81_vm1, %v69_v42 }
  0x34   :  { %955 = vmatmul.msk.f32.gmra.mxu1 %vm81_vm1, %v38_v17 }
  0x37   :  { %971 = vmatmul.msk.f32.gmra.mxu2 %vm81_vm1, %v54_v29 }
  0x3b   :  { %940 = vmatmul.msk.f32.gmra.mxu0 %vm81_vm1, %v23_v19  ;;  %987 = vmatmul.msk.f32.gmra.mxu3 %vm81_vm1, %v70_v46 }
  0x3c   :  { %956 = vmatmul.msk.f32.gmra.mxu1 %vm81_vm1, %v39_v20 }
  0x3f   :  { %972 = vmatmul.msk.f32.gmra.mxu2 %vm81_vm1, %v55_v33 }
  0x43   :  { %941 = vmatmul.msk.f32.gmra.mxu0 %vm81_vm1, %v24_v23  ;;  %988 = vmatmul.msk.f32.gmra.mxu3 %vm81_vm1, %v71_v50  ;;  %v76_v23 = vld [vmem:[%s2030_s0 + $0x1e0] sm:$0xff] }
  0x44   :  { %957 = vmatmul.msk.f32.gmra.mxu1 %vm81_vm1, %v40_v24 }
  0x47   :  { %973 = vmatmul.msk.f32.gmra.mxu2 %vm81_vm1, %v56_v37 }
  0x4b   :  { %942 = vmatmul.msk.f32.gmra.mxu0 %vm81_vm1, %v25_v27  ;;  %989 = vmatmul.msk.f32.gmra.mxu3 %vm81_vm1, %v72_v54 }
  0x4c   :  { %958 = vmatmul.msk.f32.gmra.mxu1 %vm81_vm1, %v41_v28 }
  0x4f   :  { %974 = vmatmul.msk.f32.gmra.mxu2 %vm81_vm1, %v57_v41 }
  0x53   :  { %943 = vmatmul.msk.f32.gmra.mxu0 %vm81_vm1, %v26_v31  ;;  %990 = vmatmul.msk.f32.gmra.mxu3 %vm81_vm1, %v73_v58 }
  0x54   :  { %959 = vmatmul.msk.f32.gmra.mxu1 %vm81_vm1, %v42_v32  ;;  %v77_v32 = vld [vmem:[%s2030_s0 + $0x1e8] sm:$0xff] }
  0x57   :  { %975 = vmatmul.msk.f32.gmra.mxu2 %vm81_vm1, %v58_v45 }
  0x5b   :  { %944 = vmatmul.msk.f32.gmra.mxu0 %vm81_vm1, %v27_v35  ;;  %991 = vmatmul.msk.f32.gmra.mxu3 %vm81_vm1, %v74_v6 }
  0x5c   :  { %960 = vmatmul.msk.f32.gmra.mxu1 %vm81_vm1, %v43_v36  ;;  %v78_v36 = vld [vmem:[%s2030_s0 + $0x1f0] sm:$0xff] }
  0x5f   :  { %976 = vmatmul.msk.f32.gmra.mxu2 %vm81_vm1, %v59_v49 }
  0x63   :  { %945 = vmatmul.msk.f32.gmra.mxu0 %vm81_vm1, %v28_v39  ;;  %992 = vmatmul.msk.f32.gmra.mxu3 %vm81_vm1, %v75_v15 }
  0x64   :  { %961 = vmatmul.msk.f32.gmra.mxu1 %vm81_vm1, %v44_v40  ;;  %v79_v40 = vld [vmem:[%s2030_s0 + $0x1f8] sm:$0xff] }
  0x67   :  { %977 = vmatmul.msk.f32.gmra.mxu2 %vm81_vm1, %v60_v53 }
  0x6b   :  { %946 = vmatmul.msk.f32.gmra.mxu0 %vm81_vm1, %v29_v43  ;;  %993 = vmatmul.msk.f32.gmra.mxu3 %vm81_vm1, %v76_v23 }
  0x6c   :  { %962 = vmatmul.msk.f32.gmra.mxu1 %vm81_vm1, %v45_v44 }
  0x6f   :  { %978 = vmatmul.msk.f32.gmra.mxu2 %vm81_vm1, %v61_v57 }
  0x73   :  { %947 = vmatmul.msk.f32.gmra.mxu0 %vm81_vm1, %v30_v47  ;;  %994 = vmatmul.msk.f32.gmra.mxu3 %vm81_vm1, %v77_v32 }
  0x74   :  { %963 = vmatmul.msk.f32.gmra.mxu1 %vm81_vm1, %v46_v48 }
  0x77   :  { %979 = vmatmul.msk.f32.gmra.mxu2 %vm81_vm1, %v62_v5 }
  0x7b   :  { %948 = vmatmul.msk.f32.gmra.mxu0 %vm81_vm1, %v31_v51  ;;  %995 = vmatmul.msk.f32.gmra.mxu3 %vm81_vm1, %v78_v36 }
  0x7c   :  { %964 = vmatmul.msk.f32.gmra.mxu1 %vm81_vm1, %v47_v52 }
  0x7f   :  { %980 = vmatmul.msk.f32.gmra.mxu2 %vm81_vm1, %v63_v14 }
  0x80   :  { %v295_v55 = vpop.f32.mrf.mxu0 }
  0x81   :  { %488 = vst.msk [vmem:[%s2032_s2] sm:$0xff] %vm487_vm2, %v295_v55  ;;  %v1306_v56 = vpop.f32.mrf.mxu1  ;;  %v697_v59 = vmul.f32 %v295_v55, %v295_v55  ;;  %v560_v61 = vsel %vm487_vm2, %v295_v55, 0.0 }
  0x82   :  { %504 = vst.msk [vmem:[%s2032_s2 + $0x80] sm:$0xff] %vm487_vm2, %v1306_v56 }
  0x83   :  { %v761_v2 = vsel %vm487_vm2, %v697_v59, 0.0  ;;  %996 = vmatmul.msk.f32.gmra.mxu3 %vm81_vm1, %v79_v40 }
  0x88   :  { %v298_v60 = vpop.f32.mrf.mxu0 }
  0x89   :  { %489 = vst.msk [vmem:[%s2032_s2 + $0x8] sm:$0xff] %vm487_vm2, %v298_v60  ;;  %v561_v62 = vsel %vm487_vm2, %v298_v60, 0.0  ;;  %v698_v63 = vmul.f32 %v298_v60, %v298_v60  ;;  %v1327_v0 = vpop.f32.mrf.mxu1 }
  0x8a   :  { %v562_v1 = vadd.f32 %v561_v62, %v560_v61  ;;  %505 = vst.msk [vmem:[%s2032_s2 + $0x88] sm:$0xff] %vm487_vm2, %v1327_v0  ;;  %v1382_v25 = vpop.f32.mrf.mxu2 }
  0x8b   :  { %v762_v3 = vsel %vm487_vm2, %v698_v63, 0.0  ;;  %520 = vst.msk [vmem:[%s2032_s2 + $0x100] sm:$0xff] %vm487_vm2, %v1382_v25 }
  0x8c   :  { %v763_v4 = vadd.f32 %v762_v3, %v761_v2 }
  0x8e   :  { %v1480_v47 = vpop.f32.mrf.mxu3 }
  0x8f   :  { %536 = vst.msk [vmem:[%s2032_s2 + $0x180] sm:$0xff] %vm487_vm2, %v1480_v47 }
  0x90   :  { %v301_v7 = vpop.f32.mrf.mxu0 }
  0x91   :  { %490 = vst.msk [vmem:[%s2032_s2 + $0x10] sm:$0xff] %vm487_vm2, %v301_v7  ;;  %v563_v8 = vsel %vm487_vm2, %v301_v7, 0.0  ;;  %v699_v9 = vmul.f32 %v301_v7, %v301_v7  ;;  %v1349_v10 = vpop.f32.mrf.mxu1 }
  0x92   :  { %v564_v11 = vadd.f32 %v563_v8, %v562_v1  ;;  %506 = vst.msk [vmem:[%s2032_s2 + $0x90] sm:$0xff] %vm487_vm2, %v1349_v10  ;;  %v1410_v34 = vpop.f32.mrf.mxu2 }
  0x93   :  { %v764_v12 = vsel %vm487_vm2, %v699_v9, 0.0  ;;  %521 = vst.msk [vmem:[%s2032_s2 + $0x108] sm:$0xff] %vm487_vm2, %v1410_v34 }
  0x94   :  { %v765_v13 = vadd.f32 %v764_v12, %v763_v4 }
  0x96   :  { %v1505_v51 = vpop.f32.mrf.mxu3 }
  0x97   :  { %537 = vst.msk [vmem:[%s2032_s2 + $0x188] sm:$0xff] %vm487_vm2, %v1505_v51 }
  0x98   :  { %v304_v16 = vpop.f32.mrf.mxu0 }
  0x99   :  { %491 = vst.msk [vmem:[%s2032_s2 + $0x18] sm:$0xff] %vm487_vm2, %v304_v16  ;;  %v565_v17 = vsel %vm487_vm2, %v304_v16, 0.0  ;;  %v700_v18 = vmul.f32 %v304_v16, %v304_v16  ;;  %v1370_v19 = vpop.f32.mrf.mxu1 }
  0x9a   :  { %v566_v20 = vadd.f32 %v565_v17, %v564_v11  ;;  %507 = vst.msk [vmem:[%s2032_s2 + $0x98] sm:$0xff] %vm487_vm2, %v1370_v19  ;;  %v1432_v38 = vpop.f32.mrf.mxu2 }
  0x9b   :  { %v766_v21 = vsel %vm487_vm2, %v700_v18, 0.0  ;;  %522 = vst.msk [vmem:[%s2032_s2 + $0x110] sm:$0xff] %vm487_vm2, %v1432_v38 }
  0x9c   :  { %v767_v22 = vadd.f32 %v766_v21, %v765_v13 }
  0x9e   :  { %v1530_v55 = vpop.f32.mrf.mxu3 }
  0x9f   :  { %538 = vst.msk [vmem:[%s2032_s2 + $0x190] sm:$0xff] %vm487_vm2, %v1530_v55 }
  0xa0   :  { %v307_v24 = vpop.f32.mrf.mxu0 }
  0xa1   :  { %492 = vst.msk [vmem:[%s2032_s2 + $0x20] sm:$0xff] %vm487_vm2, %v307_v24  ;;  %v567_v26 = vsel %vm487_vm2, %v307_v24, 0.0  ;;  %v701_v27 = vmul.f32 %v307_v24, %v307_v24  ;;  %v1389_v28 = vpop.f32.mrf.mxu1 }
  0xa2   :  { %v1391_v29 = vadd.f32 %v567_v26, %v566_v20  ;;  %508 = vst.msk [vmem:[%s2032_s2 + $0xa0] sm:$0xff] %vm487_vm2, %v1389_v28  ;;  %v1454_v42 = vpop.f32.mrf.mxu2 }
  0xa3   :  { %v768_v30 = vsel %vm487_vm2, %v701_v27, 0.0  ;;  %523 = vst.msk [vmem:[%s2032_s2 + $0x118] sm:$0xff] %vm487_vm2, %v1454_v42 }
  0xa4   :  { %v1404_v31 = vadd.f32 %v768_v30, %v767_v22 }
  0xa6   :  { %v1555_v60 = vpop.f32.mrf.mxu3 }
  0xa7   :  { %539 = vst.msk [vmem:[%s2032_s2 + $0x198] sm:$0xff] %vm487_vm2, %v1555_v60 }
  0xa8   :  { %v310_v33 = vpop.f32.mrf.mxu0 }
  0xa9   :  { %493 = vst.msk [vmem:[%s2032_s2 + $0x28] sm:$0xff] %vm487_vm2, %v310_v33  ;;  %v1416_v35 = vpop.f32.mrf.mxu1  ;;  %v702_v63 = vmul.f32 %v310_v33, %v310_v33  ;;  %v569_v3 = vsel %vm487_vm2, %v310_v33, 0.0 }
  0xaa   :  { %509 = vst.msk [vmem:[%s2032_s2 + $0xa8] sm:$0xff] %vm487_vm2, %v1416_v35  ;;  %v1472_v45 = vpop.f32.mrf.mxu2  ;;  %v570_v8 = vadd.f32 %v569_v3, %v1391_v29 }
  0xab   :  { %524 = vst.msk [vmem:[%s2032_s2 + $0x120] sm:$0xff] %vm487_vm2, %v1472_v45  ;;  %v770_v5 = vsel %vm487_vm2, %v702_v63, 0.0 }
  0xac   :  { %v771_v13 = vadd.f32 %v770_v5, %v1404_v31 }
  0xae   :  { %v1580_v2 = vpop.f32.mrf.mxu3 }
  0xaf   :  { %540 = vst.msk [vmem:[%s2032_s2 + $0x1a0] sm:$0xff] %vm487_vm2, %v1580_v2 }
  0xb0   :  { %v313_v37 = vpop.f32.mrf.mxu0 }
  0xb1   :  { %494 = vst.msk [vmem:[%s2032_s2 + $0x30] sm:$0xff] %vm487_vm2, %v313_v37  ;;  %v1438_v39 = vpop.f32.mrf.mxu1  ;;  %v703_v4 = vmul.f32 %v313_v37, %v313_v37  ;;  %v571_v6 = vsel %vm487_vm2, %v313_v37, 0.0 }
  0xb2   :  { %510 = vst.msk [vmem:[%s2032_s2 + $0xb0] sm:$0xff] %vm487_vm2, %v1438_v39  ;;  %v1497_v49 = vpop.f32.mrf.mxu2  ;;  %v572_v14 = vadd.f32 %v571_v6, %v570_v8 }
  0xb3   :  { %525 = vst.msk [vmem:[%s2032_s2 + $0x128] sm:$0xff] %vm487_vm2, %v1497_v49  ;;  %v772_v9 = vsel %vm487_vm2, %v703_v4, 0.0 }
  0xb4   :  { %v773_v23 = vadd.f32 %v772_v9, %v771_v13 }
  0xb6   :  { %v1614_v22 = vpop.f32.mrf.mxu3 }
  0xb7   :  { %541 = vst.msk [vmem:[%s2032_s2 + $0x1a8] sm:$0xff] %vm487_vm2, %v1614_v22 }
  0xb8   :  { %v316_v41 = vpop.f32.mrf.mxu0 }
  0xb9   :  { %495 = vst.msk [vmem:[%s2032_s2 + $0x38] sm:$0xff] %vm487_vm2, %v316_v41  ;;  %v1460_v43 = vpop.f32.mrf.mxu1  ;;  %v704_v7 = vmul.f32 %v316_v41, %v316_v41  ;;  %v573_v11 = vsel %vm487_vm2, %v316_v41, 0.0 }
  0xba   :  { %511 = vst.msk [vmem:[%s2032_s2 + $0xb8] sm:$0xff] %vm487_vm2, %v1460_v43  ;;  %v1522_v53 = vpop.f32.mrf.mxu2  ;;  %v574_v24 = vadd.f32 %v573_v11, %v572_v14 }
  0xbb   :  { %526 = vst.msk [vmem:[%s2032_s2 + $0x130] sm:$0xff] %vm487_vm2, %v1522_v53  ;;  %v774_v17 = vsel %vm487_vm2, %v704_v7, 0.0 }
  0xbc   :  { %v775_v30 = vadd.f32 %v774_v17, %v773_v23 }
  0xbe   :  { %v1647_v9 = vpop.f32.mrf.mxu3 }
  0xbf   :  { %542 = vst.msk [vmem:[%s2032_s2 + $0x1b0] sm:$0xff] %vm487_vm2, %v1647_v9 }
  0xc0   :  { %v319_v44 = vpop.f32.mrf.mxu0 }
  0xc1   :  { %496 = vst.msk [vmem:[%s2032_s2 + $0x40] sm:$0xff] %vm487_vm2, %v319_v44  ;;  %v1478_v46 = vpop.f32.mrf.mxu1  ;;  %v705_v12 = vmul.f32 %v319_v44, %v319_v44  ;;  %v575_v18 = vsel %vm487_vm2, %v319_v44, 0.0 }
  0xc2   :  { %512 = vst.msk [vmem:[%s2032_s2 + $0xc0] sm:$0xff] %vm487_vm2, %v1478_v46  ;;  %v1547_v58 = vpop.f32.mrf.mxu2  ;;  %v576_v31 = vadd.f32 %v575_v18, %v574_v24 }
  0xc3   :  { %527 = vst.msk [vmem:[%s2032_s2 + $0x138] sm:$0xff] %vm487_vm2, %v1547_v58  ;;  %v776_v26 = vsel %vm487_vm2, %v705_v12, 0.0 }
  0xc4   :  { %v777_v37 = vadd.f32 %v776_v26, %v775_v30 }
  0xc8   :  { %v322_v48 = vpop.f32.mrf.mxu0 }
  0xc9   :  { %497 = vst.msk [vmem:[%s2032_s2 + $0x48] sm:$0xff] %vm487_vm2, %v322_v48  ;;  %v1503_v50 = vpop.f32.mrf.mxu1  ;;  %v706_v20 = vmul.f32 %v322_v48, %v322_v48  ;;  %v577_v27 = vsel %vm487_vm2, %v322_v48, 0.0 }
  0xca   :  { %513 = vst.msk [vmem:[%s2032_s2 + $0xc8] sm:$0xff] %vm487_vm2, %v1503_v50  ;;  %v1572_v62 = vpop.f32.mrf.mxu2  ;;  %v578_v40 = vadd.f32 %v577_v27, %v576_v31  ;;  %v713_v31 = vmul.f32 %v1306_v56, %v1306_v56 }
  0xcb   :  { %528 = vst.msk [vmem:[%s2032_s2 + $0x140] sm:$0xff] %vm487_vm2, %v1572_v62  ;;  %v778_v32 = vsel %vm487_vm2, %v706_v20, 0.0 }
  0xcc   :  { %v779_v63 = vadd.f32 %v778_v32, %v777_v37  ;;  %v1680_v37 = vpop.f32.mrf.mxu3 }
  0xcd   :  { %543 = vst.msk [vmem:[%s2032_s2 + $0x1b8] sm:$0xff] %vm487_vm2, %v1680_v37 }
  0xd0   :  { %v325_v52 = vpop.f32.mrf.mxu0 }
  0xd1   :  { %498 = vst.msk [vmem:[%s2032_s2 + $0x50] sm:$0xff] %vm487_vm2, %v325_v52  ;;  %v1528_v54 = vpop.f32.mrf.mxu1  ;;  %v707_v29 = vmul.f32 %v325_v52, %v325_v52  ;;  %v579_v33 = vsel %vm487_vm2, %v325_v52, 0.0 }
  0xd2   :  { %514 = vst.msk [vmem:[%s2032_s2 + $0xd0] sm:$0xff] %vm487_vm2, %v1528_v54  ;;  %v1604_v16 = vpop.f32.mrf.mxu2  ;;  %v580_v3 = vadd.f32 %v579_v33, %v578_v40 }
  0xd3   :  { %529 = vst.msk [vmem:[%s2032_s2 + $0x148] sm:$0xff] %vm487_vm2, %v1604_v16  ;;  %v780_v41 = vsel %vm487_vm2, %v707_v29, 0.0 }
  0xd8   :  { %v328_v57 = vpop.f32.mrf.mxu0 }
  0xd9   :  { %499 = vst.msk [vmem:[%s2032_s2 + $0x58] sm:$0xff] %vm487_vm2, %v328_v57  ;;  %v1553_v59 = vpop.f32.mrf.mxu1  ;;  %v708_v36 = vmul.f32 %v328_v57, %v328_v57  ;;  %v581_v44 = vsel %vm487_vm2, %v328_v57, 0.0  ;;  %v781_v57 = vadd.f32 %v780_v41, %v779_v63 }
  0xda   :  { %515 = vst.msk [vmem:[%s2032_s2 + $0xd8] sm:$0xff] %vm487_vm2, %v1553_v59  ;;  %v1637_v5 = vpop.f32.mrf.mxu2  ;;  %v582_v11 = vadd.f32 %v581_v44, %v580_v3  ;;  %v591_v44 = vsel %vm487_vm2, %v1306_v56, 0.0  ;;  %v792_v56 = vsel %vm487_vm2, %v713_v31, 0.0 }
  0xdb   :  { %v782_v6 = vsel %vm487_vm2, %v708_v36, 0.0  ;;  %530 = vst.msk [vmem:[%s2032_s2 + $0x150] sm:$0xff] %vm487_vm2, %v1637_v5 }
  0xdc   :  { %v783_v14 = vadd.f32 %v782_v6, %v781_v57  ;;  %v593_v6 = vsel %vm487_vm2, %v1327_v0, 0.0 }
  0xe0   :  { %v331_v61 = vpop.f32.mrf.mxu0 }
  0xe1   :  { %500 = vst.msk [vmem:[%s2032_s2 + $0x60] sm:$0xff] %vm487_vm2, %v331_v61  ;;  %v1578_v1 = vpop.f32.mrf.mxu1  ;;  %v709_v48 = vmul.f32 %v331_v61, %v331_v61  ;;  %v583_v7 = vsel %vm487_vm2, %v331_v61, 0.0 }
  0xe2   :  { %516 = vst.msk [vmem:[%s2032_s2 + $0xe0] sm:$0xff] %vm487_vm2, %v1578_v1  ;;  %v584_v17 = vadd.f32 %v583_v7, %v582_v11  ;;  %v1669_v30 = vpop.f32.mrf.mxu2  ;;  %v715_v7 = vmul.f32 %v1349_v10, %v1349_v10 }
  0xe3   :  { %v784_v61 = vsel %vm487_vm2, %v709_v48, 0.0  ;;  %v714_v48 = vmul.f32 %v1327_v0, %v1327_v0  ;;  %531 = vst.msk [vmem:[%s2032_s2 + $0x158] sm:$0xff] %vm487_vm2, %v1669_v30  ;;  %v597_v0 = vsel %vm487_vm2, %v1370_v19, 0.0 }
  0xe5   :  { %v794_v11 = vsel %vm487_vm2, %v714_v48, 0.0  ;;  %v720_v48 = vmul.f32 %v1460_v43, %v1460_v43 }
  0xe8   :  { %v334_v15 = vpop.f32.mrf.mxu0 }
  0xe9   :  { %501 = vst.msk [vmem:[%s2032_s2 + $0x68] sm:$0xff] %vm487_vm2, %v334_v15  ;;  %v1612_v21 = vpop.f32.mrf.mxu1  ;;  %v710_v8 = vmul.f32 %v334_v15, %v334_v15  ;;  %v585_v12 = vsel %vm487_vm2, %v334_v15, 0.0  ;;  %v785_v15 = vadd.f32 %v784_v61, %v783_v14  ;;  %v595_v61 = vsel %vm487_vm2, %v1349_v10, 0.0  ;;  %v1724_v10 = vpop.f32.mrf.mxu3 }
  0xea   :  { %517 = vst.msk [vmem:[%s2032_s2 + $0xe8] sm:$0xff] %vm487_vm2, %v1612_v21  ;;  %v586_v23 = vadd.f32 %v585_v12, %v584_v17  ;;  %v716_v12 = vmul.f32 %v1370_v19, %v1370_v19  ;;  %v1712_v17 = vpop.f32.mrf.mxu2 }
  0xeb   :  { %v786_v18 = vsel %vm487_vm2, %v710_v8, 0.0  ;;  %532 = vst.msk [vmem:[%s2032_s2 + $0x160] sm:$0xff] %vm487_vm2, %v1712_v17 }
  0xec   :  { %v787_v26 = vadd.f32 %v786_v18, %v785_v15  ;;  %v796_v18 = vsel %vm487_vm2, %v715_v7, 0.0  ;;  %544 = vst.msk [vmem:[%s2032_s2 + $0x1c0] sm:$0xff] %vm487_vm2, %v1724_v10  ;;  %v798_v19 = vsel %vm487_vm2, %v716_v12, 0.0 }
  0xf0   :  { %v337_v4 = vpop.f32.mrf.mxu0 }
  0xf1   :  { %502 = vst.msk [vmem:[%s2032_s2 + $0x70] sm:$0xff] %vm487_vm2, %v337_v4  ;;  %v1645_v52 = vpop.f32.mrf.mxu1  ;;  %v711_v13 = vmul.f32 %v337_v4, %v337_v4  ;;  %v587_v20 = vsel %vm487_vm2, %v337_v4, 0.0 }
  0xf2   :  { %518 = vst.msk [vmem:[%s2032_s2 + $0xf0] sm:$0xff] %vm487_vm2, %v1645_v52  ;;  %v588_v27 = vadd.f32 %v587_v20, %v586_v23  ;;  %v717_v20 = vmul.f32 %v1389_v28, %v1389_v28 }
  0xf3   :  { %v788_v24 = vsel %vm487_vm2, %v711_v13, 0.0 }
  0xf4   :  { %v789_v40 = vadd.f32 %v788_v24, %v787_v26  ;;  %v599_v24 = vsel %vm487_vm2, %v1389_v28, 0.0  ;;  %v718_v26 = vmul.f32 %v1416_v35, %v1416_v35  ;;  %v800_v31 = vsel %vm487_vm2, %v717_v20, 0.0 }
  0xf5   :  { %v603_v28 = vsel %vm487_vm2, %v1438_v39, 0.0 }
  0xf8   :  { %v340_v29 = vpop.f32.mrf.mxu0 }
  0xf9   :  { %503 = vst.msk [vmem:[%s2032_s2 + $0x78] sm:$0xff] %vm487_vm2, %v340_v29  ;;  %v589_v32 = vsel %vm487_vm2, %v340_v29, 0.0  ;;  %v712_v33 = vmul.f32 %v340_v29, %v340_v29  ;;  %v1678_v36 = vpop.f32.mrf.mxu1 }
  0xfa   :  { %v590_v41 = vadd.f32 %v589_v32, %v588_v27  ;;  %519 = vst.msk [vmem:[%s2032_s2 + $0xf8] sm:$0xff] %vm487_vm2, %v1678_v36  ;;  %v601_v32 = vsel %vm487_vm2, %v1416_v35, 0.0  ;;  %v605_v35 = vsel %vm487_vm2, %v1460_v43, 0.0  ;;  %v806_v43 = vsel %vm487_vm2, %v720_v48, 0.0 }
  0xfb   :  { %v790_v63 = vsel %vm487_vm2, %v712_v33, 0.0  ;;  %v719_v33 = vmul.f32 %v1438_v39, %v1438_v39  ;;  %v1758_v39 = vpop.f32.mrf.mxu3  ;;  %v617_v48 = vsel %vm487_vm2, %v1612_v21, 0.0 }
  0xfc   :  { %v592_v3 = vadd.f32 %v591_v44, %v590_v41  ;;  %v791_v4 = vadd.f32 %v790_v63, %v789_v40  ;;  %v802_v44 = vsel %vm487_vm2, %v718_v26, 0.0  ;;  %545 = vst.msk [vmem:[%s2032_s2 + $0x1c8] sm:$0xff] %vm487_vm2, %v1758_v39 }
  0xfe   :  { %v594_v8 = vadd.f32 %v593_v6, %v592_v3  ;;  %v793_v57 = vadd.f32 %v792_v56, %v791_v4  ;;  %v1746_v4 = vpop.f32.mrf.mxu2  ;;  %v804_v56 = vsel %vm487_vm2, %v719_v33, 0.0  ;;  %v721_v6 = vmul.f32 %v1478_v46, %v1478_v46 }
  0xff   :  { %533 = vst.msk [vmem:[%s2032_s2 + $0x168] sm:$0xff] %vm487_vm2, %v1746_v4  ;;  %v615_v33 = vsel %vm487_vm2, %v1578_v1, 0.0 }
 0x100   :  { %v596_v13 = vadd.f32 %v595_v61, %v594_v8  ;;  %v795_v14 = vadd.f32 %v794_v11, %v793_v57  ;;  %v607_v57 = vsel %vm487_vm2, %v1478_v46, 0.0  ;;  %v722_v11 = vmul.f32 %v1503_v50, %v1503_v50 }
 0x101   :  { %v611_v46 = vsel %vm487_vm2, %v1528_v54, 0.0 }
 0x102   :  { %v598_v15 = vadd.f32 %v597_v0, %v596_v13  ;;  %v797_v23 = vadd.f32 %v796_v18, %v795_v14  ;;  %v808_v13 = vsel %vm487_vm2, %v721_v6, 0.0  ;;  %v609_v14 = vsel %vm487_vm2, %v1503_v50, 0.0 }
 0x103   :  { %v723_v18 = vmul.f32 %v1528_v54, %v1528_v54  ;;  %v613_v50 = vsel %vm487_vm2, %v1553_v59, 0.0  ;;  %v1792_v54 = vpop.f32.mrf.mxu3  ;;  %v619_v6 = vsel %vm487_vm2, %v1645_v52, 0.0 }
 0x104   :  { %v600_v27 = vadd.f32 %v599_v24, %v598_v15  ;;  %v799_v29 = vadd.f32 %v798_v19, %v797_v23  ;;  %v810_v15 = vsel %vm487_vm2, %v722_v11, 0.0  ;;  %v724_v23 = vmul.f32 %v1553_v59, %v1553_v59  ;;  %546 = vst.msk [vmem:[%s2032_s2 + $0x1d0] sm:$0xff] %vm487_vm2, %v1792_v54 }
 0x106   :  { %v602_v40 = vadd.f32 %v601_v32, %v600_v27  ;;  %v801_v41 = vadd.f32 %v800_v31, %v799_v29  ;;  %v1780_v26 = vpop.f32.mrf.mxu2  ;;  %v812_v27 = vsel %vm487_vm2, %v723_v18, 0.0  ;;  %v725_v29 = vmul.f32 %v1578_v1, %v1578_v1 }
 0x107   :  { %534 = vst.msk [vmem:[%s2032_s2 + $0x170] sm:$0xff] %vm487_vm2, %v1780_v26  ;;  %v814_v59 = vsel %vm487_vm2, %v724_v23, 0.0 }
 0x108   :  { %v803_v63 = vadd.f32 %v802_v44, %v801_v41  ;;  %v604_v3 = vadd.f32 %v603_v28, %v602_v40  ;;  %v726_v40 = vmul.f32 %v1612_v21, %v1612_v21  ;;  %v816_v28 = vsel %vm487_vm2, %v725_v29, 0.0 }
 0x109   :  { %v729_v21 = vmul.f32 %v1382_v25, %v1382_v25 }
 0x10a   :  { %v606_v7 = vadd.f32 %v605_v35, %v604_v3  ;;  %v805_v8 = vadd.f32 %v804_v56, %v803_v63  ;;  %v727_v63 = vmul.f32 %v1645_v52, %v1645_v52  ;;  %v728_v3 = vmul.f32 %v1678_v36, %v1678_v36 }
 0x10b   :  { %v818_v1 = vsel %vm487_vm2, %v726_v40, 0.0  ;;  %v1827_v52 = vpop.f32.mrf.mxu3 }
 0x10c   :  { %v608_v61 = vadd.f32 %v607_v57, %v606_v7  ;;  %v807_v12 = vadd.f32 %v806_v43, %v805_v8  ;;  %v621_v7 = vsel %vm487_vm2, %v1678_v36, 0.0  ;;  %v820_v11 = vsel %vm487_vm2, %v727_v63, 0.0  ;;  %547 = vst.msk [vmem:[%s2032_s2 + $0x1d8] sm:$0xff] %vm487_vm2, %v1827_v52 }
 0x10d   :  { %v633_v63 = vsel %vm487_vm2, %v1497_v49, 0.0 }
 0x10e   :  { %v610_v0 = vadd.f32 %v609_v14, %v608_v61  ;;  %v809_v20 = vadd.f32 %v808_v13, %v807_v12  ;;  %v1816_v57 = vpop.f32.mrf.mxu2  ;;  %v822_v61 = vsel %vm487_vm2, %v728_v3, 0.0  ;;  %v623_v13 = vsel %vm487_vm2, %v1382_v25, 0.0 }
 0x10f   :  { %535 = vst.msk [vmem:[%s2032_s2 + $0x178] sm:$0xff] %vm487_vm2, %v1816_v57  ;;  %v730_v14 = vmul.f32 %v1410_v34, %v1410_v34  ;;  %v627_v25 = vsel %vm487_vm2, %v1432_v38, 0.0  ;;  %v735_v3 = vmul.f32 %v1522_v53, %v1522_v53 }
 0x110   :  { %v612_v19 = vadd.f32 %v611_v46, %v610_v0  ;;  %v811_v24 = vadd.f32 %v810_v15, %v809_v20  ;;  %v824_v20 = vsel %vm487_vm2, %v729_v21, 0.0  ;;  %v625_v15 = vsel %vm487_vm2, %v1410_v34, 0.0 }
 0x111   :  { %v731_v46 = vmul.f32 %v1432_v38, %v1432_v38  ;;  %v629_v34 = vsel %vm487_vm2, %v1454_v42, 0.0  ;;  %v737_v21 = vmul.f32 %v1572_v62, %v1572_v62 }
 0x112   :  { %v614_v31 = vadd.f32 %v613_v50, %v612_v19  ;;  %v813_v32 = vadd.f32 %v812_v27, %v811_v24  ;;  %v826_v24 = vsel %vm487_vm2, %v730_v14, 0.0  ;;  %v732_v27 = vmul.f32 %v1454_v42, %v1454_v42 }
 0x113   :  { %v734_v42 = vmul.f32 %v1497_v49, %v1497_v49  ;;  %v637_v49 = vsel %vm487_vm2, %v1547_v58, 0.0 }
 0x114   :  { %v815_v41 = vadd.f32 %v814_v59, %v813_v32  ;;  %v616_v44 = vadd.f32 %v615_v33, %v614_v31  ;;  %v828_v31 = vsel %vm487_vm2, %v731_v46, 0.0  ;;  %v733_v32 = vmul.f32 %v1472_v45, %v1472_v45  ;;  %v1853_v59 = vpop.f32.mrf.mxu3 }
 0x115   :  { %548 = vst.msk [vmem:[%s2032_s2 + $0x1e0] sm:$0xff] %vm487_vm2, %v1853_v59  ;;  %v830_v38 = vsel %vm487_vm2, %v732_v27, 0.0 }
 0x116   :  { %v817_v56 = vadd.f32 %v816_v28, %v815_v41  ;;  %v618_v35 = vadd.f32 %v617_v48, %v616_v44  ;;  %v631_v41 = vsel %vm487_vm2, %v1472_v45, 0.0  ;;  %v832_v48 = vsel %vm487_vm2, %v733_v32, 0.0 }
 0x117   :  { %v635_v45 = vsel %vm487_vm2, %v1522_v53, 0.0  ;;  %v647_v32 = vsel %vm487_vm2, %v1712_v17, 0.0 }
 0x118   :  { %v819_v8 = vadd.f32 %v818_v1, %v817_v56  ;;  %v620_v43 = vadd.f32 %v619_v6, %v618_v35  ;;  %v834_v1 = vsel %vm487_vm2, %v734_v42, 0.0  ;;  %v736_v6 = vmul.f32 %v1547_v58, %v1547_v58 }
 0x119   :  { %v738_v58 = vmul.f32 %v1604_v16, %v1604_v16  ;;  %v743_v42 = vmul.f32 %v1780_v26, %v1780_v26 }
 0x11a   :  { %v821_v36 = vadd.f32 %v820_v11, %v819_v8  ;;  %v622_v12 = vadd.f32 %v621_v7, %v620_v43  ;;  %v836_v43 = vsel %vm487_vm2, %v735_v3, 0.0  ;;  %v838_v53 = vsel %vm487_vm2, %v736_v6, 0.0 }
 0x11b   :  { %v653_v3 = vsel %vm487_vm2, %v1816_v57, 0.0 }
 0x11c   :  { %v624_v18 = vadd.f32 %v623_v13, %v622_v12  ;;  %v823_v0 = vadd.f32 %v822_v61, %v821_v36  ;;  %v1880_v11 = vpop.f32.mrf.mxu3  ;;  %v639_v12 = vsel %vm487_vm2, %v1572_v62, 0.0  ;;  %v643_v62 = vsel %vm487_vm2, %v1637_v5, 0.0 }
 0x11d   :  { %549 = vst.msk [vmem:[%s2032_s2 + $0x1e8] sm:$0xff] %vm487_vm2, %v1880_v11 }
 0x11e   :  { %v626_v23 = vadd.f32 %v625_v15, %v624_v18  ;;  %v825_v19 = vadd.f32 %v824_v20, %v823_v0  ;;  %v840_v18 = vsel %vm487_vm2, %v737_v21, 0.0  ;;  %v641_v0 = vsel %vm487_vm2, %v1604_v16, 0.0 }
 0x11f   :  { %v739_v20 = vmul.f32 %v1637_v5, %v1637_v5  ;;  %v645_v16 = vsel %vm487_vm2, %v1669_v30, 0.0 }
 0x120   :  { %v628_v50 = vadd.f32 %v627_v25, %v626_v23  ;;  %v827_v29 = vadd.f32 %v826_v24, %v825_v19  ;;  %v842_v23 = vsel %vm487_vm2, %v738_v58, 0.0  ;;  %v740_v19 = vmul.f32 %v1669_v30, %v1669_v30 }
 0x121   :  { %v844_v27 = vsel %vm487_vm2, %v739_v20, 0.0  ;;  %v742_v30 = vmul.f32 %v1746_v4, %v1746_v4  ;;  %v661_v20 = vsel %vm487_vm2, %v1555_v60, 0.0 }
 0x122   :  { %v630_v33 = vadd.f32 %v629_v34, %v628_v50  ;;  %v829_v40 = vadd.f32 %v828_v31, %v827_v29  ;;  %v741_v50 = vmul.f32 %v1712_v17, %v1712_v17  ;;  %v846_v5 = vsel %vm487_vm2, %v740_v19, 0.0 }
 0x123   :  { %v850_v17 = vsel %vm487_vm2, %v742_v30, 0.0  ;;  %v750_v19 = vmul.f32 %v1614_v22, %v1614_v22 }
 0x124   :  { %v632_v44 = vadd.f32 %v631_v41, %v630_v33  ;;  %v831_v28 = vadd.f32 %v830_v38, %v829_v40  ;;  %v1907_v29 = vpop.f32.mrf.mxu3  ;;  %v848_v38 = vsel %vm487_vm2, %v741_v50, 0.0  ;;  %v649_v41 = vsel %vm487_vm2, %v1746_v4, 0.0 }
 0x125   :  { %550 = vst.msk [vmem:[%s2032_s2 + $0x1f0] sm:$0xff] %vm487_vm2, %v1907_v29  ;;  %v745_v4 = vmul.f32 %v1480_v47, %v1480_v47 }
 0x126   :  { %v634_v56 = vadd.f32 %v633_v63, %v632_v44  ;;  %v833_v35 = vadd.f32 %v832_v48, %v831_v28  ;;  %v744_v44 = vmul.f32 %v1816_v57, %v1816_v57  ;;  %v651_v63 = vsel %vm487_vm2, %v1780_v26, 0.0 }
 0x127   :  { %v655_v26 = vsel %vm487_vm2, %v1480_v47, 0.0  ;;  %v856_v21 = vsel %vm487_vm2, %v745_v4, 0.0  ;;  %v748_v47 = vmul.f32 %v1555_v60, %v1555_v60  ;;  %v665_v60 = vsel %vm487_vm2, %v1614_v22, 0.0 }
 0x128   :  { %v835_v7 = vadd.f32 %v834_v1, %v833_v35  ;;  %v636_v8 = vadd.f32 %v635_v45, %v634_v56  ;;  %v852_v1 = vsel %vm487_vm2, %v743_v42, 0.0  ;;  %v854_v45 = vsel %vm487_vm2, %v744_v44, 0.0 }
 0x129   :  { %v669_v22 = vsel %vm487_vm2, %v1680_v37, 0.0  ;;  %v754_v44 = vmul.f32 %v1758_v39, %v1758_v39  ;;  %v756_v4 = vmul.f32 %v1827_v52, %v1827_v52 }
 0x12a   :  { %v638_v61 = vadd.f32 %v637_v49, %v636_v8  ;;  %v837_v36 = vadd.f32 %v836_v43, %v835_v7  ;;  %v746_v7 = vmul.f32 %v1505_v51, %v1505_v51 }
 0x12c   :  { %v640_v13 = vadd.f32 %v639_v12, %v638_v61  ;;  %v839_v14 = vadd.f32 %v838_v53, %v837_v36  ;;  %v1935_v6 = vpop.f32.mrf.mxu3  ;;  %v657_v61 = vsel %vm487_vm2, %v1505_v51, 0.0  ;;  %v747_v36 = vmul.f32 %v1530_v55, %v1530_v55 }
 0x12d   :  { %551 = vst.msk [vmem:[%s2032_s2 + $0x1f8] sm:$0xff] %vm487_vm2, %v1935_v6  ;;  %v858_v53 = vsel %vm487_vm2, %v746_v7, 0.0  ;;  %s1056_s2 = smov [#allocation2]  }
 0x12e   :  { %v642_v15 = vadd.f32 %v641_v0, %v640_v13  ;;  %v841_v46 = vadd.f32 %v840_v18, %v839_v14  ;;  %v659_v13 = vsel %vm487_vm2, %v1530_v55, 0.0  ;;  %v1055_v0 = vmov 0.0   ;;  %s903_s25 = sshll.u32 %s1056_s2, 4  ;;  %s904_s25 = int_to_ptr.vmem [resolvable:$true] %s903_s25 }
 0x12f   :  { %557 = vst.msk [vmem:[#allocation2] sm:$0x1] %vm556_vm3, %v1055_v0  ;;  %v860_v51 = vsel %vm487_vm2, %v747_v36, 0.0 }
 0x130   :  { %v644_v24 = vadd.f32 %v643_v62, %v642_v15  ;;  %v843_v25 = vadd.f32 %v842_v23, %v841_v46  ;;  %v749_v15 = vmul.f32 %v1580_v2, %v1580_v2  ;;  %558 = vst.msk [vmem:[#allocation4] sm:$0x1] %vm556_vm3, %v1055_v0  ;;  %v862_v23 = vsel %vm487_vm2, %v748_v47, 0.0 }
 0x131   :  { %v663_v62 = vsel %vm487_vm2, %v1580_v2, 0.0  ;;  %v667_v2 = vsel %vm487_vm2, %v1647_v9, 0.0  ;;  %v683_v47 = vsel %vm487_vm2, %v1907_v29, 0.0 }
 0x132   :  { %v646_v31 = vadd.f32 %v645_v16, %v644_v24  ;;  %v845_v34 = vadd.f32 %v844_v27, %v843_v25  ;;  %v864_v27 = vsel %vm487_vm2, %v749_v15, 0.0  ;;  %v751_v16 = vmul.f32 %v1647_v9, %v1647_v9 }
 0x133   :  { %v671_v9 = vsel %vm487_vm2, %v1724_v10, 0.0 }
 0x134   :  { %v847_v33 = vadd.f32 %v846_v5, %v845_v34  ;;  %v648_v40 = vadd.f32 %v647_v32, %v646_v31  ;;  %v866_v34 = vsel %vm487_vm2, %v750_v19, 0.0  ;;  %v752_v5 = vmul.f32 %v1680_v37, %v1680_v37 }
 0x135   :  { %v673_v37 = vsel %vm487_vm2, %v1758_v39, 0.0  ;;  %v677_v39 = vsel %vm487_vm2, %v1827_v52, 0.0  ;;  %v681_v52 = vsel %vm487_vm2, %v1880_v11, 0.0 }
 0x136   :  { %v849_v28 = vadd.f32 %v848_v38, %v847_v33  ;;  %v650_v48 = vadd.f32 %v649_v41, %v648_v40  ;;  %v868_v33 = vsel %vm487_vm2, %v751_v16, 0.0  ;;  %v753_v40 = vmul.f32 %v1724_v10, %v1724_v10  ;;  %v559_v16 = vld [vmem:[#allocation2] sm:$0x1] }
 0x137   :  { %v870_v42 = vsel %vm487_vm2, %v752_v5, 0.0  ;;  %v675_v10 = vsel %vm487_vm2, %v1792_v54, 0.0 }
 0x138   :  { %v851_v56 = vadd.f32 %v850_v17, %v849_v28  ;;  %v652_v35 = vadd.f32 %v651_v63, %v650_v48  ;;  %v872_v17 = vsel %vm487_vm2, %v753_v40, 0.0  ;;  %v755_v63 = vmul.f32 %v1792_v54, %v1792_v54 }
 0x139   :  { %v679_v54 = vsel %vm487_vm2, %v1853_v59, 0.0 }
 0x13a   :  { %v853_v8 = vadd.f32 %v852_v1, %v851_v56  ;;  %v654_v43 = vadd.f32 %v653_v3, %v652_v35  ;;  %v874_v35 = vsel %vm487_vm2, %v754_v44, 0.0  ;;  %v876_v7 = vsel %vm487_vm2, %v755_v63, 0.0 }
 0x13c   :  { %v656_v57 = vadd.f32 %v655_v26, %v654_v43  ;;  %v855_v49 = vadd.f32 %v854_v45, %v853_v8  ;;  %v757_v8 = vmul.f32 %v1853_v59, %v1853_v59 }
 0x13e   :  { %v658_v12 = vadd.f32 %v657_v61, %v656_v57  ;;  %v857_v58 = vadd.f32 %v856_v21, %v855_v49  ;;  %v878_v57 = vsel %vm487_vm2, %v756_v4, 0.0  ;;  %v758_v49 = vmul.f32 %v1880_v11, %v1880_v11 }
 0x13f   :  { %v880_v36 = vsel %vm487_vm2, %v757_v8, 0.0 }
 0x140   :  { %v660_v14 = vadd.f32 %v659_v13, %v658_v12  ;;  %v859_v18 = vadd.f32 %v858_v53, %v857_v58  ;;  %v759_v53 = vmul.f32 %v1907_v29, %v1907_v29  ;;  %v760_v12 = vmul.f32 %v1935_v6, %v1935_v6 }
 0x141   :  { %v882_v59 = vsel %vm487_vm2, %v758_v49, 0.0 }
 0x142   :  { %v662_v55 = vadd.f32 %v661_v20, %v660_v14  ;;  %v861_v46 = vadd.f32 %v860_v51, %v859_v18  ;;  %v685_v14 = vsel %vm487_vm2, %v1935_v6, 0.0  ;;  %v884_v11 = vsel %vm487_vm2, %v759_v53, 0.0 }
 0x143   :  { %v886_v51 = vsel %vm487_vm2, %v760_v12, 0.0 }
 0x144   :  { %v664_v24 = vadd.f32 %v663_v62, %v662_v55  ;;  %v863_v25 = vadd.f32 %v862_v23, %v861_v46 }
 0x146   :  { %v666_v50 = vadd.f32 %v665_v60, %v664_v24  ;;  %v865_v31 = vadd.f32 %v864_v27, %v863_v25 }
 0x148   :  { %v867_v32 = vadd.f32 %v866_v34, %v865_v31  ;;  %v668_v30 = vadd.f32 %v667_v2, %v666_v50  ;;  %v696_v31 = vld [vmem:[#allocation4] sm:$0x1] }
 0x14a   :  { %v670_v38 = vadd.f32 %v669_v22, %v668_v30  ;;  %v869_v41 = vadd.f32 %v868_v33, %v867_v32 }
 0x14c   :  { %v672_v28 = vadd.f32 %v671_v9, %v670_v38  ;;  %v871_v48 = vadd.f32 %v870_v42, %v869_v41 }
 0x14e   :  { %v674_v3 = vadd.f32 %v673_v37, %v672_v28  ;;  %v873_v56 = vadd.f32 %v872_v17, %v871_v48 }
 0x150   :  { %v676_v1 = vadd.f32 %v675_v10, %v674_v3  ;;  %v875_v45 = vadd.f32 %v874_v35, %v873_v56 }
 0x152   :  { %v678_v43 = vadd.f32 %v677_v39, %v676_v1  ;;  %v877_v26 = vadd.f32 %v876_v7, %v875_v45 }
 0x154   :  { %v879_v21 = vadd.f32 %v878_v57, %v877_v26  ;;  %v680_v61 = vadd.f32 %v679_v54, %v678_v43 }
 0x156   :  { %v881_v58 = vadd.f32 %v880_v36, %v879_v21  ;;  %v682_v13 = vadd.f32 %v681_v52, %v680_v61 }
 0x158   :  { %v883_v18 = vadd.f32 %v882_v59, %v881_v58  ;;  %v684_v0 = vadd.f32 %v683_v47, %v682_v13 }
 0x15a   :  { %v885_v20 = vadd.f32 %v884_v11, %v883_v18  ;;  %v686_v15 = vadd.f32 %v685_v14, %v684_v0 }
 0x15c   :  { %v687_v55 = vrot.slane %v686_v15, 4  ;;  %v887_v46 = vadd.f32 %v886_v51, %v885_v20 }
 0x15e   :  { %v688_v23 = vadd.f32 %v687_v55, %v686_v15  ;;  %v888_v62 = vrot.slane %v887_v46, 4 }
 0x160   :  { %v689_v19 = vrot.slane %v688_v23, 2  ;;  %v889_v24 = vadd.f32 %v888_v62, %v887_v46 }
 0x162   :  { %v690_v25 = vadd.f32 %v689_v19, %v688_v23  ;;  %v890_v27 = vrot.slane %v889_v24, 2 }
 0x164   :  { %v691_v29 = vrot.slane %v690_v25, 1  ;;  %v891_v60 = vadd.f32 %v890_v27, %v889_v24 }
 0x166   :  { %v892_v6 = vrot.slane %v891_v60, 1  ;;  %v692_v50 = vadd.f32 %v691_v29, %v690_v25 }
 0x168   :  { %v693_v34 = vadd.f32 %v692_v50, %v559_v16  ;;  %v893_v2 = vadd.f32 %v892_v6, %v891_v60 }
 0x16a   :  { %695 = vst.msk [vmem:[#allocation2] sm:$0x1] %vm556_vm3, %v693_v34  ;;  %v894_v5 = vadd.f32 %v893_v2, %v696_v31 }
 0x16b   :  { %908 = dma.vmem_to_hbm [thread:$0]  %s904_s25, 16, %s906_s28, [#allocation3]  }
 0x16c   :  { %895 = vst.msk [vmem:[#allocation4] sm:$0x1] %vm556_vm3, %v894_v5 }
 0x16d   :  { %919 = dma.vmem_to_hbm [thread:$0]  %s915_s30, 16, %s917_s7, [#allocation5]  }
 0x16e   :  { %1051 = dma.done.wait [#allocation3], 16  }
 0x16f   :  { %1052 = vsyncadd [#allocation3], 4294967280 }
 0x170   :  { %1053 = dma.done.wait [#allocation5], 16  }
 0x171   :  { %1054 = vsyncadd [#allocation5], 4294967280 }
 0x172   :  { %930 = vsyncpa [#allocation3], 1 }
 0x173   :  { %931 = vsyncpa [#allocation5], 1 }

</bundles_post_ra>
